<compile_context>
chip_gen: v5e
topology: v5e:2x2
jax: 0.10.0
libtpu: 0.0.40
codegen_flags: <defaults>
</compile_context>

<pallas_src>
import jax
import jax.numpy as jnp
import numpy as np
from jax.experimental import pallas as pl
from jax.experimental.pallas import tpu as pltpu

# Mild version defensiveness (never used on current jax).
_CompilerParams = getattr(pltpu, "CompilerParams", None) or getattr(pltpu, "TPUCompilerParams")
_ANY = getattr(pl, "ANY", None)
if _ANY is None:  # pragma: no cover - very old jax fallback
    _ANY = pltpu.TPUMemorySpace.ANY


def _round_up(a, b):
    return ((a + b - 1) // b) * b


def _device_kind():
    try:
        return jax.devices()[0].device_kind.lower()
    except Exception:
        return ""


def _default_num_parts():
    # Two TensorCores per chip only on v7x; v5e / v6e are single-TC.
    return 2 if "7" in _device_kind() else 1


def _pick_vmem_limit(est_bytes):
    # Small problems fit the default scoped limit on every generation -> leave alone.
    if est_bytes <= 12 * 1024 * 1024:
        return None
    if "7" in _device_kind():
        return 56 * 1024 * 1024      # v7x: 64 MiB physical, leave headroom
    return 100 * 1024 * 1024         # v5e / v6e: 128 MiB physical


def _fused_dora_qkv_kernel(x_ref, wqkvT_hbm, mq_ref, mv_ref, bT_ref, aT_ref,
                           bias_ref, o_ref, w_scratch, build_ref, dma_sem):
    """
    x_ref:      (tm, dim)      token tile, original dtype (cast in-kernel)
    wqkvT_hbm:  (3, dim, dim)  frozen qkv weight, per-slab transposed, f32, HBM (pl.ANY)
    mq_ref/mv_ref: (dim, 1)    DoRA magnitudes as column vectors, f32
    bT_ref:     (2, dim, r)    [lora_B_q^T, lora_B_v^T], f32
    aT_ref:     (2, r, dim)    [lora_A_q^T, lora_A_v^T], f32
    bias_ref:   (1, 3*dim)     f32
    o_ref:      (tm, 3*dim)
    w_scratch:  (dim, 3*dim)   adapted weight (transposed layout), compute dtype, persistent
    build_ref:  (dim, dim)     f32 staging buffer, reused for the q / k / v slabs
    dma_sem:    DMA semaphore
    """
    dim = build_ref.shape[0]

    # Build the DoRA-adapted weight once per core (first step of the "arbitrary" axis).
    @pl.when(pl.program_id(1) == 0)
    def _build_weight():
        def load_slab(s):
            # s is a static Python int (0=q, 1=k, 2=v); one (dim, dim) f32 DMA from HBM.
            cp = pltpu.make_async_copy(wqkvT_hbm.at[s], build_ref, dma_sem)
            cp.start()
            cp.wait()

        def dora_block(idx, m_col):
            # (W + A B)^T = W^T + B^T A^T ; build_ref already holds W^T.
            adapted_t = build_ref[...] + jnp.dot(
                bT_ref[idx], aT_ref[idx], preferred_element_type=jnp.float32)
            # Column norm over out-features == row norm in transposed layout.
            # No epsilon, matching the PyTorch reference (raw norm divide).
            inv = jax.lax.rsqrt(
                jnp.sum(adapted_t * adapted_t, axis=1, keepdims=True))   # (dim, 1)
            return (adapted_t * (m_col * inv)).astype(w_scratch.dtype)

        # q block
        load_slab(0)
        w_scratch[:, :dim] = dora_block(0, mq_ref[...])
        # k block: frozen pass-through
        load_slab(1)
        w_scratch[:, dim:2 * dim] = build_ref[...].astype(w_scratch.dtype)
        # v block
        load_slab(2)
        w_scratch[:, 2 * dim:] = dora_block(1, mv_ref[...])

    # Per-token-tile linear: plain x @ W (no transpose in the hot loop), f32 accumulation.
    x_tile = x_ref[...].astype(w_scratch.dtype)
    acc = jnp.dot(x_tile, w_scratch[...], preferred_element_type=jnp.float32)
    o_ref[...] = (acc + bias_ref[...]).astype(o_ref.dtype)


def dora_qkv_forward(x, weight, bias, m_q, m_v,
                     lora_A_q, lora_B_q, lora_A_v, lora_B_v,
                     *, tm=None, num_parallel_parts=None, compute_dtype=None,
                     out_dtype=None, vmem_limit_bytes=None):
    """x: (B, N, C); weight: (3*C, C) like nn.Linear(dim, 3*dim).weight; bias: (3*C,).
       m_q/m_v: (1, C); lora_A_*: (C, r); lora_B_*: (r, C).
       Returns (B, N, 3*C), same semantics as F.linear(x, new_weights, bias)."""
    B, N, C = x.shape
    dim = C
    out_dim = weight.shape[0]                       # 3*dim
    assert out_dim == 3 * dim
    r = lora_A_q.shape[-1]

    out_dtype = x.dtype if out_dtype is None else out_dtype
    if compute_dtype is None:
        # bf16 is MXU-native and halves VMEM/HBM traffic; use it at real SAM dims.
        compute_dtype = jnp.bfloat16 if dim >= 768 else x.dtype
    compute_dtype = jnp.dtype(compute_dtype)

    # ---- token tiling (prefer a tile that divides M -> no wrapper-side pad) ----
    M = B * N
    if tm is None:
        tm = 512 if dim >= 768 else 256             # sweepable: {256, 512}
    tm = max(8, (int(tm) // 8) * 8)
    if M <= tm:
        tm = _round_up(M, 8)
    elif M % tm != 0:
        for cand in range(tm, max(tm // 2, 8) - 1, -8):
            if M % cand == 0:
                tm = cand
                break

    if num_parallel_parts is None:
        num_parallel_parts = _default_num_parts()   # 1 on v5e/v6e, 2 on v7x
    tiles0 = -(-M // tm)
    parts = max(1, min(int(num_parallel_parts), tiles0))
    tiles = _round_up(tiles0, parts)
    tiles_per_part = tiles // parts
    M_pad = tiles * tm

    x_flat = x.reshape(M, dim)                      # original dtype; kernel casts per-tile
    if M_pad != M:
        x_flat = jnp.pad(x_flat, ((0, M_pad - M), (0, 0)))

    # ---- one-time parameter re-layout (frozen weight stays in HBM) ----
    w3t = jnp.transpose(weight.astype(jnp.float32).reshape(3, dim, dim), (0, 2, 1))
    mq_col = jnp.reshape(m_q, (dim, 1)).astype(jnp.float32)
    mv_col = jnp.reshape(m_v, (dim, 1)).astype(jnp.float32)
    bT_stack = jnp.stack([lora_B_q.T, lora_B_v.T]).astype(jnp.float32)   # (2, dim, r)
    aT_stack = jnp.stack([lora_A_q.T, lora_A_v.T]).astype(jnp.float32)   # (2, r, dim)
    bias2d = jnp.reshape(bias, (1, out_dim)).astype(jnp.float32)

    # ---- VMEM budgeting: only raise the scoped limit when actually needed ----
    if vmem_limit_bytes is None:
        xb = jnp.dtype(x.dtype).itemsize
        ob = jnp.dtype(out_dtype).itemsize
        cb = compute_dtype.itemsize
        est = (2 * tm * dim * xb                    # double-buffered x tiles
               + 2 * tm * out_dim * ob              # double-buffered out tiles
               + dim * out_dim * cb                 # resident adapted weight
               + 3 * dim * dim * 4                  # build buffer + build transients (f32)
               + 8 * dim * 128 * 4                  # small lane-padded consts (generous)
               + (1 << 20))
        vmem_limit_bytes = _pick_vmem_limit(est)

    grid = (parts, tiles_per_part)
    tok_map = lambda i, j: (i * tiles_per_part + j, 0)    # unique token block per (i, j)
    cmap2 = lambda i, j: (0, 0)                           # resident parameters
    cmap3 = lambda i, j: (0, 0, 0)

    out_flat = pl.pallas_call(
        _fused_dora_qkv_kernel,
        out_shape=jax.ShapeDtypeStruct((M_pad, out_dim), out_dtype),
        grid=grid,
        in_specs=[
            pl.BlockSpec((tm, dim), tok_map),             # x tile
            pl.BlockSpec(memory_space=_ANY),              # frozen weight slabs (HBM)
            pl.BlockSpec((dim, 1), cmap2),                # m_q (column)
            pl.BlockSpec((dim, 1), cmap2),                # m_v (column)
            pl.BlockSpec((2, dim, r), cmap3),             # [B_q^T, B_v^T]
            pl.BlockSpec((2, r, dim), cmap3),             # [A_q^T, A_v^T]
            pl.BlockSpec((1, out_dim), cmap2),            # bias
        ],
        out_specs=pl.BlockSpec((tm, out_dim), tok_map),
        scratch_shapes=[
            pltpu.VMEM((dim, out_dim), compute_dtype),    # adapted W^T, resident
            pltpu.VMEM((dim, dim), jnp.float32),          # per-slab build buffer
            pltpu.SemaphoreType.DMA,                      # slab DMA semaphore
        ],
        compiler_params=_CompilerParams(
            dimension_semantics=("parallel", "arbitrary"),
            vmem_limit_bytes=vmem_limit_bytes),
    )(x_flat, w3t, mq_col, mv_col, bT_stack, aT_stack, bias2d)

    return out_flat[:M].reshape(B, N, out_dim)


def reference_forward(x, weight, bias, m_q, m_v, A_q, B_q, A_v, B_v):
    dim = x.shape[-1]
    adapted_q = weight[:dim, :] + A_q @ B_q
    norm_q = jnp.linalg.norm(adapted_q, axis=0, keepdims=True)
    calc_q = m_q * (adapted_q / norm_q)
    adapted_v = weight[-dim:, :] + A_v @ B_v
    norm_v = jnp.linalg.norm(adapted_v, axis=0, keepdims=True)
    calc_v = m_v * (adapted_v / norm_v)
    new_w = jnp.concatenate([calc_q, weight[dim:-dim, :], calc_v], axis=0)
    return x @ new_w.T + bias


if __name__ == "__main__":
    # Small shapes consistent with the module: B=2 images, N=8 tokens, dim=32, r=4.
    B, N, dim, r = 2, 8, 32, 4
    key = jax.random.PRNGKey(0)
    k_w, k_b, k_x, k_aq, k_bq, k_av, k_bv, k_x2 = jax.random.split(key, 8)

    weight = jax.random.normal(k_w, (3 * dim, dim), jnp.float32) * 0.05
    bias = jax.random.normal(k_b, (3 * dim,), jnp.float32) * 0.01
    x = jax.random.normal(k_x, (B, N, dim), jnp.float32)

    # m_q / m_v initialized as in the module: column norms of the frozen q/v weights.
    m_q = jnp.linalg.norm(weight[:dim, :], axis=0, keepdims=True)       # (1, dim)
    m_v = jnp.linalg.norm(weight[-dim:, :], axis=0, keepdims=True)      # (1, dim)

    std_dev = 1.0 / jnp.sqrt(jnp.float32(r))
    lora_A_q = jax.random.normal(k_aq, (dim, r), jnp.float32) * std_dev
    lora_A_v = jax.random.normal(k_av, (dim, r), jnp.float32) * std_dev
    # Module inits lora_B_* to zeros; use small non-zero values so the DoRA path is
    # actually exercised (pure parameter choice, forward semantics unchanged).
    lora_B_q = jax.random.normal(k_bq, (r, dim), jnp.float32) * 0.02
    lora_B_v = jax.random.normal(k_bv, (r, dim), jnp.float32) * 0.02

    ref = reference_forward(x, weight, bias, m_q, m_v,
                            lora_A_q, lora_B_q, lora_A_v, lora_B_v)

    # 1) default path (f32 compute at this small dim): tight check.
    out = jax.block_until_ready(dora_qkv_forward(
        x, weight, bias, m_q, m_v, lora_A_q, lora_B_q, lora_A_v, lora_B_v))
    assert out.shape == (B, N, 3 * dim)
    np.testing.assert_allclose(np.asarray(out), np.asarray(ref), rtol=1e-4, atol=1e-4)

    # 2) bf16 compute path (default at real SAM dims): loose check.
    out_bf16 = jax.block_until_ready(dora_qkv_forward(
        x, weight, bias, m_q, m_v, lora_A_q, lora_B_q, lora_A_v, lora_B_v,
        compute_dtype=jnp.bfloat16))
    np.testing.assert_allclose(np.asarray(out_bf16), np.asarray(ref),
                               rtol=3e-2, atol=3e-2)

    # 3) uneven token count (exercises the padding path) + 2-way "parallel" axis
    #    (exercises the per-part weight-rebuild guard even on single-TC chips).
    x2 = jax.random.normal(k_x2, (B, 9, dim), jnp.float32)
    ref2 = reference_forward(x2, weight, bias, m_q, m_v,
                             lora_A_q, lora_B_q, lora_A_v, lora_B_v)
    out2 = jax.block_until_ready(dora_qkv_forward(
        x2, weight, bias, m_q, m_v, lora_A_q, lora_B_q, lora_A_v, lora_B_v,
        tm=8, num_parallel_parts=2))
    np.testing.assert_allclose(np.asarray(out2), np.asarray(ref2), rtol=1e-4, atol=1e-4)

    # TODO(synk): DoRA_Sam.forward delegates to the full SAM model (image encoder /
    # prompt encoder / mask decoder); only the DoRA-adapted qkv projection — the part
    # this module actually modifies — is implemented as a Pallas kernel.
    print("KERNEL_OK")
</pallas_src>

<mosaic_0001>
module attributes {stable_mosaic.version = 11 : i64} {
  func.func @_fused_dora_qkv_kernel(%arg0: i32, %arg1: i32, %arg2: memref<16x32xf32, #tpu.memory_space<vmem>>, %arg3: memref<3x32x32xf32, #tpu.memory_space<any>>, %arg4: memref<32x1xf32, #tpu.memory_space<vmem>>, %arg5: memref<32x1xf32, #tpu.memory_space<vmem>>, %arg6: memref<2x32x4xf32, #tpu.memory_space<vmem>>, %arg7: memref<2x4x32xf32, #tpu.memory_space<vmem>>, %arg8: memref<1x96xf32, #tpu.memory_space<vmem>>, %arg9: memref<16x96xf32, #tpu.memory_space<vmem>>, %arg10: memref<32x96xf32, #tpu.memory_space<vmem>>, %arg11: memref<32x32xf32, #tpu.memory_space<vmem>>, %arg12: memref<!tpu.dma_semaphore, #tpu.memory_space<semaphore_mem>>) attributes {dimension_semantics = [#tpu.dimension_semantics<parallel>, #tpu.dimension_semantics<arbitrary>], iteration_bounds = array<i64: 1, 1>, scalar_prefetch = 0 : i64, scratch_operands = 3 : i64, tpu.core_type = #tpu.core_type<tc>, window_params = [{transform_indices = @transform_0, window_bounds = array<i64: 16, 32>}, {}, {pipeline_mode = #tpu.pipeline_mode<synchronous>, transform_indices = @transform_2, window_bounds = array<i64: 32, 1>}, {pipeline_mode = #tpu.pipeline_mode<synchronous>, transform_indices = @transform_3, window_bounds = array<i64: 32, 1>}, {pipeline_mode = #tpu.pipeline_mode<synchronous>, transform_indices = @transform_4, window_bounds = array<i64: 2, 32, 4>}, {pipeline_mode = #tpu.pipeline_mode<synchronous>, transform_indices = @transform_5, window_bounds = array<i64: 2, 4, 32>}, {pipeline_mode = #tpu.pipeline_mode<synchronous>, transform_indices = @transform_6, window_bounds = array<i64: 1, 96>}, {transform_indices = @transform_7, window_bounds = array<i64: 16, 96>}]} {
    %c0_i32 = arith.constant 0 : i32
    %0 = arith.cmpi eq, %arg1, %c0_i32 : i32
    %1 = arith.extui %0 : i1 to i32
    %c0_i32_0 = arith.constant 0 : i32
    %2 = arith.cmpi ne, %1, %c0_i32_0 : i32
    scf.if %2 {
      %c0_i32_8 = arith.constant 0 : i32
      %c0_i32_9 = arith.constant 0 : i32
      %c0_i32_10 = arith.constant 0 : i32
      %10 = tpu.memref_slice %arg3[%c0_i32_8, %c0_i32_9, %c0_i32_10] : memref<3x32x32xf32, #tpu.memory_space<any>> -> memref<1x32x32xf32, #tpu.memory_space<any>>
      %11 = tpu.memref_squeeze %10 : memref<1x32x32xf32, #tpu.memory_space<any>> -> memref<32x32xf32, #tpu.memory_space<any>>
      tpu.enqueue_dma source(%11 : memref<32x32xf32, #tpu.memory_space<any>>) target(%arg11 : memref<32x32xf32, #tpu.memory_space<vmem>>) target_semaphore(%arg12 : memref<!tpu.dma_semaphore, #tpu.memory_space<semaphore_mem>>)
      %c0_i32_11 = arith.constant 0 : i32
      %c0_i32_12 = arith.constant 0 : i32
      %c0_i32_13 = arith.constant 0 : i32
      %12 = tpu.memref_slice %arg3[%c0_i32_11, %c0_i32_12, %c0_i32_13] : memref<3x32x32xf32, #tpu.memory_space<any>> -> memref<1x32x32xf32, #tpu.memory_space<any>>
      %13 = tpu.memref_squeeze %12 : memref<1x32x32xf32, #tpu.memory_space<any>> -> memref<32x32xf32, #tpu.memory_space<any>>
      tpu.wait_dma2 semaphore(%arg12 : memref<!tpu.dma_semaphore, #tpu.memory_space<semaphore_mem>>) src(%13 : memref<32x32xf32, #tpu.memory_space<any>>) dst(%arg11 : memref<32x32xf32, #tpu.memory_space<vmem>>)
      %c0_14 = arith.constant 0 : index
      %c0_15 = arith.constant 0 : index
      %14 = vector.load %arg4[%c0_14, %c0_15] : memref<32x1xf32, #tpu.memory_space<vmem>>, vector<32x1xf32>
      %c0_16 = arith.constant 0 : index
      %c0_17 = arith.constant 0 : index
      %15 = vector.load %arg11[%c0_16, %c0_17] : memref<32x32xf32, #tpu.memory_space<vmem>>, vector<32x32xf32>
      %c0_18 = arith.constant 0 : index
      %c0_19 = arith.constant 0 : index
      %c0_20 = arith.constant 0 : index
      %16 = vector.load %arg6[%c0_18, %c0_19, %c0_20] : memref<2x32x4xf32, #tpu.memory_space<vmem>>, vector<1x32x4xf32>
      %17 = vector.shape_cast %16 : vector<1x32x4xf32> to vector<32x4xf32>
      %c0_21 = arith.constant 0 : index
      %c0_22 = arith.constant 0 : index
      %c0_23 = arith.constant 0 : index
      %18 = vector.load %arg7[%c0_21, %c0_22, %c0_23] : memref<2x4x32xf32, #tpu.memory_space<vmem>>, vector<1x4x32xf32>
      %19 = vector.shape_cast %18 : vector<1x4x32xf32> to vector<4x32xf32>
      %cst_24 = arith.constant dense<0.000000e+00> : vector<32x32xf32>
      %20 = tpu.matmul %17, %19, %cst_24 {dimension_numbers = #tpu.dot_dimension_numbers<[1], [0], [0], [1], [0, 0, 1, 1], [], []>} : vector<32x4xf32>, vector<4x32xf32>, vector<32x32xf32> -> vector<32x32xf32>
      %21 = arith.addf %15, %20 : vector<32x32xf32>
      %22 = arith.mulf %21, %21 : vector<32x32xf32>
      %cst_25 = arith.constant dense<0.000000e+00> : vector<32xf32>
      %23 = vector.multi_reduction <add>, %22, %cst_25 [1] : vector<32x32xf32> to vector<32xf32>
      %24 = vector.shape_cast %23 : vector<32xf32> to vector<32x1xf32>
      %25 = math.rsqrt %24 : vector<32x1xf32>
      %26 = arith.mulf %14, %25 : vector<32x1xf32>
      %27 = vector.broadcast %26 : vector<32x1xf32> to vector<32x32xf32>
      %28 = arith.mulf %21, %27 : vector<32x32xf32>
      %c0_26 = arith.constant 0 : index
      %c0_27 = arith.constant 0 : index
      %29 = vector.load %arg10[%c0_26, %c0_27] : memref<32x96xf32, #tpu.memory_space<vmem>>, vector<32x32xf32>
      tpu.vector_store %arg10[%c0_26, %c0_27], %28 {strides = array<i32>} : memref<32x96xf32, #tpu.memory_space<vmem>>, vector<32x32xf32>,
      %c1_i32 = arith.constant 1 : i32
      %c0_i32_28 = arith.constant 0 : i32
      %c0_i32_29 = arith.constant 0 : i32
      %30 = tpu.memref_slice %arg3[%c1_i32, %c0_i32_28, %c0_i32_29] : memref<3x32x32xf32, #tpu.memory_space<any>> -> memref<1x32x32xf32, #tpu.memory_space<any>>
      %31 = tpu.memref_squeeze %30 : memref<1x32x32xf32, #tpu.memory_space<any>> -> memref<32x32xf32, #tpu.memory_space<any>>
      tpu.enqueue_dma source(%31 : memref<32x32xf32, #tpu.memory_space<any>>) target(%arg11 : memref<32x32xf32, #tpu.memory_space<vmem>>) target_semaphore(%arg12 : memref<!tpu.dma_semaphore, #tpu.memory_space<semaphore_mem>>)
      %c1_i32_30 = arith.constant 1 : i32
      %c0_i32_31 = arith.constant 0 : i32
      %c0_i32_32 = arith.constant 0 : i32
      %32 = tpu.memref_slice %arg3[%c1_i32_30, %c0_i32_31, %c0_i32_32] : memref<3x32x32xf32, #tpu.memory_space<any>> -> memref<1x32x32xf32, #tpu.memory_space<any>>
      %33 = tpu.memref_squeeze %32 : memref<1x32x32xf32, #tpu.memory_space<any>> -> memref<32x32xf32, #tpu.memory_space<any>>
      tpu.wait_dma2 semaphore(%arg12 : memref<!tpu.dma_semaphore, #tpu.memory_space<semaphore_mem>>) src(%33 : memref<32x32xf32, #tpu.memory_space<any>>) dst(%arg11 : memref<32x32xf32, #tpu.memory_space<vmem>>)
      %c0_33 = arith.constant 0 : index
      %c0_34 = arith.constant 0 : index
      %34 = vector.load %arg11[%c0_33, %c0_34] : memref<32x32xf32, #tpu.memory_space<vmem>>, vector<32x32xf32>
      %c0_35 = arith.constant 0 : index
      %c32 = arith.constant 32 : index
      %35 = vector.load %arg10[%c0_35, %c32] : memref<32x96xf32, #tpu.memory_space<vmem>>, vector<32x32xf32>
      tpu.vector_store %arg10[%c0_35, %c32], %34 {strides = array<i32>} : memref<32x96xf32, #tpu.memory_space<vmem>>, vector<32x32xf32>,
      %c2_i32 = arith.constant 2 : i32
      %c0_i32_36 = arith.constant 0 : i32
      %c0_i32_37 = arith.constant 0 : i32
      %36 = tpu.memref_slice %arg3[%c2_i32, %c0_i32_36, %c0_i32_37] : memref<3x32x32xf32, #tpu.memory_space<any>> -> memref<1x32x32xf32, #tpu.memory_space<any>>
      %37 = tpu.memref_squeeze %36 : memref<1x32x32xf32, #tpu.memory_space<any>> -> memref<32x32xf32, #tpu.memory_space<any>>
      tpu.enqueue_dma source(%37 : memref<32x32xf32, #tpu.memory_space<any>>) target(%arg11 : memref<32x32xf32, #tpu.memory_space<vmem>>) target_semaphore(%arg12 : memref<!tpu.dma_semaphore, #tpu.memory_space<semaphore_mem>>)
      %c2_i32_38 = arith.constant 2 : i32
      %c0_i32_39 = arith.constant 0 : i32
      %c0_i32_40 = arith.constant 0 : i32
      %38 = tpu.memref_slice %arg3[%c2_i32_38, %c0_i32_39, %c0_i32_40] : memref<3x32x32xf32, #tpu.memory_space<any>> -> memref<1x32x32xf32, #tpu.memory_space<any>>
      %39 = tpu.memref_squeeze %38 : memref<1x32x32xf32, #tpu.memory_space<any>> -> memref<32x32xf32, #tpu.memory_space<any>>
      tpu.wait_dma2 semaphore(%arg12 : memref<!tpu.dma_semaphore, #tpu.memory_space<semaphore_mem>>) src(%39 : memref<32x32xf32, #tpu.memory_space<any>>) dst(%arg11 : memref<32x32xf32, #tpu.memory_space<vmem>>)
      %c0_41 = arith.constant 0 : index
      %c0_42 = arith.constant 0 : index
      %40 = vector.load %arg5[%c0_41, %c0_42] : memref<32x1xf32, #tpu.memory_space<vmem>>, vector<32x1xf32>
      %c0_43 = arith.constant 0 : index
      %c0_44 = arith.constant 0 : index
      %41 = vector.load %arg11[%c0_43, %c0_44] : memref<32x32xf32, #tpu.memory_space<vmem>>, vector<32x32xf32>
      %c1 = arith.constant 1 : index
      %c0_45 = arith.constant 0 : index
      %c0_46 = arith.constant 0 : index
      %42 = vector.load %arg6[%c1, %c0_45, %c0_46] : memref<2x32x4xf32, #tpu.memory_space<vmem>>, vector<1x32x4xf32>
      %43 = vector.shape_cast %42 : vector<1x32x4xf32> to vector<32x4xf32>
      %c1_47 = arith.constant 1 : index
      %c0_48 = arith.constant 0 : index
      %c0_49 = arith.constant 0 : index
      %44 = vector.load %arg7[%c1_47, %c0_48, %c0_49] : memref<2x4x32xf32, #tpu.memory_space<vmem>>, vector<1x4x32xf32>
      %45 = vector.shape_cast %44 : vector<1x4x32xf32> to vector<4x32xf32>
      %cst_50 = arith.constant dense<0.000000e+00> : vector<32x32xf32>
      %46 = tpu.matmul %43, %45, %cst_50 {dimension_numbers = #tpu.dot_dimension_numbers<[1], [0], [0], [1], [0, 0, 1, 1], [], []>} : vector<32x4xf32>, vector<4x32xf32>, vector<32x32xf32> -> vector<32x32xf32>
      %47 = arith.addf %41, %46 : vector<32x32xf32>
      %48 = arith.mulf %47, %47 : vector<32x32xf32>
      %cst_51 = arith.constant dense<0.000000e+00> : vector<32xf32>
      %49 = vector.multi_reduction <add>, %48, %cst_51 [1] : vector<32x32xf32> to vector<32xf32>
      %50 = vector.shape_cast %49 : vector<32xf32> to vector<32x1xf32>
      %51 = math.rsqrt %50 : vector<32x1xf32>
      %52 = arith.mulf %40, %51 : vector<32x1xf32>
      %53 = vector.broadcast %52 : vector<32x1xf32> to vector<32x32xf32>
      %54 = arith.mulf %47, %53 : vector<32x32xf32>
      %c0_52 = arith.constant 0 : index
      %c64 = arith.constant 64 : index
      %55 = vector.load %arg10[%c0_52, %c64] : memref<32x96xf32, #tpu.memory_space<vmem>>, vector<32x32xf32>
      tpu.vector_store %arg10[%c0_52, %c64], %54 {strides = array<i32>} : memref<32x96xf32, #tpu.memory_space<vmem>>, vector<32x32xf32>,
    } else {
    }
    %c0 = arith.constant 0 : index
    %c0_1 = arith.constant 0 : index
    %3 = vector.load %arg2[%c0, %c0_1] : memref<16x32xf32, #tpu.memory_space<vmem>>, vector<16x32xf32>
    %c0_2 = arith.constant 0 : index
    %c0_3 = arith.constant 0 : index
    %4 = vector.load %arg10[%c0_2, %c0_3] : memref<32x96xf32, #tpu.memory_space<vmem>>, vector<32x96xf32>
    %cst = arith.constant dense<0.000000e+00> : vector<16x96xf32>
    %5 = tpu.matmul %3, %4, %cst {dimension_numbers = #tpu.dot_dimension_numbers<[1], [0], [0], [1], [0, 0, 1, 1], [], []>} : vector<16x32xf32>, vector<32x96xf32>, vector<16x96xf32> -> vector<16x96xf32>
    %c0_4 = arith.constant 0 : index
    %c0_5 = arith.constant 0 : index
    %6 = vector.load %arg8[%c0_4, %c0_5] : memref<1x96xf32, #tpu.memory_space<vmem>>, vector<1x96xf32>
    %7 = vector.broadcast %6 : vector<1x96xf32> to vector<16x96xf32>
    %8 = arith.addf %5, %7 : vector<16x96xf32>
    %c0_6 = arith.constant 0 : index
    %c0_7 = arith.constant 0 : index
    %9 = vector.load %arg9[%c0_6, %c0_7] : memref<16x96xf32, #tpu.memory_space<vmem>>, vector<16x96xf32>
    tpu.vector_store %arg9[%c0_6, %c0_7], %8 {strides = array<i32>} : memref<16x96xf32, #tpu.memory_space<vmem>>, vector<16x96xf32>,
    return
  }
  func.func @transform_0(%arg0: i32, %arg1: i32) -> (i32, i32) {
    %c1_i32 = arith.constant 1 : i32
    %0 = arith.muli %arg0, %c1_i32 : i32
    %1 = arith.addi %0, %arg1 : i32
    %c0_i32 = arith.constant 0 : i32
    %c0_i32_0 = arith.constant 0 : i32
    return %1, %c0_i32 : i32, i32
  }
  func.func @transform_2(%arg0: i32, %arg1: i32) -> (i32, i32) {
    %c0_i32 = arith.constant 0 : i32
    %c0_i32_0 = arith.constant 0 : i32
    %c0_i32_1 = arith.constant 0 : i32
    return %c0_i32, %c0_i32_0 : i32, i32
  }
  func.func @transform_3(%arg0: i32, %arg1: i32) -> (i32, i32) {
    %c0_i32 = arith.constant 0 : i32
    %c0_i32_0 = arith.constant 0 : i32
    %c0_i32_1 = arith.constant 0 : i32
    return %c0_i32, %c0_i32_0 : i32, i32
  }
  func.func @transform_4(%arg0: i32, %arg1: i32) -> (i32, i32, i32) {
    %c0_i32 = arith.constant 0 : i32
    %c0_i32_0 = arith.constant 0 : i32
    %c0_i32_1 = arith.constant 0 : i32
    %c0_i32_2 = arith.constant 0 : i32
    return %c0_i32, %c0_i32_0, %c0_i32_1 : i32, i32, i32
  }
  func.func @transform_5(%arg0: i32, %arg1: i32) -> (i32, i32, i32) {
    %c0_i32 = arith.constant 0 : i32
    %c0_i32_0 = arith.constant 0 : i32
    %c0_i32_1 = arith.constant 0 : i32
    %c0_i32_2 = arith.constant 0 : i32
    return %c0_i32, %c0_i32_0, %c0_i32_1 : i32, i32, i32
  }
  func.func @transform_6(%arg0: i32, %arg1: i32) -> (i32, i32) {
    %c0_i32 = arith.constant 0 : i32
    %c0_i32_0 = arith.constant 0 : i32
    %c0_i32_1 = arith.constant 0 : i32
    return %c0_i32, %c0_i32_0 : i32, i32
  }
  func.func @transform_7(%arg0: i32, %arg1: i32) -> (i32, i32) {
    %c1_i32 = arith.constant 1 : i32
    %0 = arith.muli %arg0, %c1_i32 : i32
    %1 = arith.addi %0, %arg1 : i32
    %c0_i32 = arith.constant 0 : i32
    %c0_i32_0 = arith.constant 0 : i32
    return %1, %c0_i32 : i32, i32
  }
}

</mosaic_0001>

<bundles_post_ra>
// kernel: tpu_custom_call.1
= control target key start
LH: loop header
LB: loop body
LE: loop exit
PB: predicated region body
PF: predicated region fallthrough
CT: control target
= control target key end

     0   :  { %12 = vsyncpa [#allocation6], 0  ;;  %s889_s0 = inlined_call_operand.vmem [shape: f32[16,32], index: 0, kind: input, shape index: {}]   ;;  %s890_s1 = inlined_call_operand.vmem [shape: f32[3,32,32], index: 1, kind: input, shape index: {}]   ;;  %s891_s2 = inlined_call_operand.vmem [shape: f32[32,1], index: 2, kind: input, shape index: {}]   ;;  %s892_s3 = inlined_call_operand.vmem [shape: f32[32,1], index: 3, kind: input, shape index: {}]   ;;  %s893_s4 = inlined_call_operand.vmem [shape: f32[2,32,4], index: 4, kind: input, shape index: {}]   ;;  %s894_s5 = inlined_call_operand.vmem [shape: f32[2,4,32], index: 5, kind: input, shape index: {}]   ;;  %s895_s6 = inlined_call_operand.vmem [shape: f32[1,96], index: 6, kind: input, shape index: {}]   ;;  %s896_s7 = inlined_call_operand.hbm [shape: f32[16,96], index: 7, kind: output, shape index: {}]  }
   0x1   :  { %v63_v0 = vld [vmem:[%s890_s1] sm:$0xff]  ;;  %v65_v1 = vld [vmem:[%s890_s1 + $0x8] sm:$0xff]  ;;  %v67_v2 = vld [vmem:[%s890_s1 + $0x10] sm:$0xff] }
   0x2   :  { %v69_v3 = vld [vmem:[%s890_s1 + $0x18] sm:$0xff] }
   0x3   :  { %76 = vsyncadd [#allocation4], 512 }
   0x4   :  { %649 = dma.done.wait [#allocation4], 512 }
   0x5   :  { %650 = vsyncadd [#allocation4], 4294966784  ;;  %vm106_vm0 = vcmask 1043456   ;;  %v718_v4 = vld [vmem:[%s890_s1 + $0x20] sm:$0xff]  ;;  %v723_v5 = vld [vmem:[%s890_s1 + $0x28] sm:$0xff]  ;;  %vm93_vm1 = vcmask 31744  }
   0x6   :  { %v728_v6 = vld [vmem:[%s890_s1 + $0x30] sm:$0xff]  ;;  %v733_v7 = vld [vmem:[%s890_s1 + $0x38] sm:$0xff]  ;;  %v92_v8 = vld [vmem:[%s894_s5] sm:$0xf]  ;;  %vm147_vm2 = vcmask 261120   ;;  %v657_v29 = vmov 0  }
   0x7   :  { %v88_v9 = vld [vmem:[%s893_s4] sm:$0xff]  ;;  %568 = vmatpush.msk.msra.mxu0 %vm106_vm0, %v92_v8  ;;  %594 = vmatpush.msk.msra.mxu3 %vm106_vm0, %v92_v8  ;;  %v89_v10 = vld [vmem:[%s893_s4 + $0x8] sm:$0xff]  ;;  %v90_v11 = vld [vmem:[%s893_s4 + $0x10] sm:$0xff] }
   0x8   :  { %569 = vmatmul.msk.f32.vlgmr.msra.gmra.mxu0 %vm93_vm1, %v88_v9  ;;  %570 = vmatmul.msk.f32.vlgmr.msra.gmra.mxu3 %vm93_vm1, %v89_v10  ;;  %v91_v12 = vld [vmem:[%s893_s4 + $0x18] sm:$0xff]  ;;  %v80_v40 = vld [vmem:[%s891_s2] sm:$0xff]  ;;  %v81_v52 = vld [vmem:[%s891_s2 + $0x8] sm:$0xff] }
   0x9   :  { %602 = vset.pattern.permute.xlu2 %v657_v29  ;;  %603 = vset.pattern.permute.xlu0 %v657_v29  ;;  %v82_v60 = vld [vmem:[%s891_s2 + $0x10] sm:$0xff] }
   0xa   :  { %604 = vset.pattern.permute.xlu1 %v657_v29 }
  0x10   :  { %571 = vmatmul.msk.f32.gmra.mxu3 %vm93_vm1, %v90_v11 }
  0x18   :  { %572 = vmatmul.msk.f32.gmra.mxu3 %vm93_vm1, %v91_v12 }
  0x85   :  { %v127_v13 = vpop.f32.mrf.mxu0 }
  0x86   :  { %v756_v14 = vadd.f32 %v127_v13, %v63_v0 }
  0x88   :  { %v143_v15 = vmul.f32 %v756_v14, %v756_v14 }
  0x8a   :  { %v148_v16 = vsel %vm147_vm2, %v143_v15, 0.0 }
  0x8b   :  { %v130_v17 = vpop.f32.mrf.mxu3  ;;  %149 = vadd.xlane.f32.xlu0 %v148_v16 }
  0x8c   :  { %v761_v18 = vadd.f32 %v130_v17, %v65_v1 }
  0x8e   :  { %v144_v19 = vmul.f32 %v761_v18, %v761_v18 }
  0x90   :  { %v151_v20 = vsel %vm147_vm2, %v144_v19, 0.0 }
  0x93   :  { %v133_v21 = vpop.f32.mrf.mxu3  ;;  %152 = vadd.xlane.f32.xlu0 %v151_v20 }
  0x94   :  { %v766_v22 = vadd.f32 %v133_v21, %v67_v2 }
  0x96   :  { %v145_v23 = vmul.f32 %v766_v22, %v766_v22 }
  0x98   :  { %v154_v24 = vsel %vm147_vm2, %v145_v23, 0.0 }
  0x99   :  { %155 = vadd.xlane.f32.xlu1 %v154_v24 }
  0x9b   :  { %v136_v25 = vpop.f32.mrf.mxu3 }
  0x9c   :  { %v771_v26 = vadd.f32 %v136_v25, %v69_v3  ;;  %v83_v3 = vld [vmem:[%s891_s2 + $0x18] sm:$0xff] }
  0x9e   :  { %v146_v27 = vmul.f32 %v771_v26, %v771_v26 }
  0xa0   :  { %v157_v28 = vsel %vm147_vm2, %v146_v27, 0.0 }
  0xa1   :  { %158 = vadd.xlane.f32.xlu1 %v157_v28 }
  0xfe   :  { %v150_v30 = vpop.xlane.xlu0 %149 }
  0xff   :  { %605 = vrsqrt.f32 %v150_v30  ;;  %vm166_vm3 = vweird.f32 %v150_v30 }
 0x105   :  { %v606_v31 = vpop.eup %605 }
 0x106   :  { %v161_v32 = vmul.f32 %v606_v31, %v150_v30  ;;  %v153_v33 = vpop.xlane.xlu0 %152  ;;  %vm167_vm4 = vweird.f32 %v606_v31 }
 0x107   :  { %607 = vrsqrt.f32 %v153_v33  ;;  %vm168_vm5 = vmor %vm166_vm3, %vm167_vm4  ;;  %vm176_vm7 = vweird.f32 %v153_v33 }
 0x108   :  { %v162_v34 = vmul.f32 %v606_v31, %v161_v32 }
 0x10a   :  { %v163_v35 = vmul.f32 0.5, %v162_v34 }
 0x10c   :  { %v164_v36 = vsub.f32 1.5, %v163_v35  ;;  %v156_v37 = vpop.xlane.xlu1 %155 }
 0x10d   :  { %v608_v38 = vpop.eup %607  ;;  %609 = vrsqrt.f32 %v156_v37  ;;  %vm186_vm10 = vweird.f32 %v156_v37 }
 0x10e   :  { %v171_v39 = vmul.f32 %v608_v38, %v153_v33  ;;  %v165_v41 = vmul.f32 %v606_v31, %v164_v36  ;;  %vm177_vm6 = vweird.f32 %v608_v38 }
 0x10f   :  { %vm178_vm8 = vmor %vm176_vm7, %vm177_vm6 }
 0x110   :  { %v172_v42 = vmul.f32 %v608_v38, %v171_v39  ;;  %v169_v43 = vsel %vm168_vm5, %v606_v31, %v165_v41 }
 0x111   :  { %v200_v44 = vmul.f32 %v169_v43, %v80_v40 }
 0x112   :  { %v173_v45 = vmul.f32 0.5, %v172_v42 }
 0x113   :  { %v610_v46 = vpop.eup %609  ;;  %206 = vperm.xlu2 %602, %v200_v44  }
 0x114   :  { %v174_v47 = vsub.f32 1.5, %v173_v45  ;;  %v181_v48 = vmul.f32 %v610_v46, %v156_v37  ;;  %v159_v49 = vpop.xlane.xlu1 %158  ;;  %vm187_vm9 = vweird.f32 %v610_v46 }
 0x115   :  { %611 = vrsqrt.f32 %v159_v49  ;;  %vm188_vm11 = vmor %vm186_vm10, %vm187_vm9  ;;  %vm196_vm13 = vweird.f32 %v159_v49 }
 0x116   :  { %v175_v50 = vmul.f32 %v608_v38, %v174_v47  ;;  %v182_v51 = vmul.f32 %v610_v46, %v181_v48 }
 0x118   :  { %v183_v53 = vmul.f32 0.5, %v182_v51  ;;  %v179_v54 = vsel %vm178_vm8, %v608_v38, %v175_v50 }
 0x119   :  { %v201_v55 = vmul.f32 %v179_v54, %v81_v52 }
 0x11a   :  { %v184_v56 = vsub.f32 1.5, %v183_v53 }
 0x11b   :  { %v612_v57 = vpop.eup %611  ;;  %211 = vperm.xlu2 %602, %v201_v55  }
 0x11c   :  { %v185_v58 = vmul.f32 %v610_v46, %v184_v56  ;;  %v191_v59 = vmul.f32 %v612_v57, %v159_v49  ;;  %vm197_vm12 = vweird.f32 %v612_v57 }
 0x11d   :  { %vm198_vm14 = vmor %vm196_vm13, %vm197_vm12 }
 0x11e   :  { %v192_v61 = vmul.f32 %v612_v57, %v191_v59  ;;  %v189_v62 = vsel %vm188_vm11, %v610_v46, %v185_v58 }
 0x11f   :  { %v202_v63 = vmul.f32 %v189_v62, %v82_v60 }
 0x120   :  { %v193_v0 = vmul.f32 0.5, %v192_v61 }
 0x121   :  { %216 = vperm.xlu0 %603, %v202_v63  }
 0x122   :  { %v194_v1 = vsub.f32 1.5, %v193_v0 }
 0x124   :  { %v195_v2 = vmul.f32 %v612_v57, %v194_v1 }
 0x126   :  { %v199_v8 = vsel %vm198_vm14, %v612_v57, %v195_v2 }
 0x127   :  { %v203_v9 = vmul.f32 %v199_v8, %v83_v3 }
 0x129   :  { %221 = vperm.xlu1 %604, %v203_v9  }
 0x16d   :  { %v207_v10 = vpop.permute.xlu2 %206 }
 0x16e   :  { %v224_v11 = vmul.f32 %v207_v10, %v756_v14 }
 0x170   :  { %228 = vst.msk [vmem:[#allocation2] sm:$0xff] %vm147_vm2, %v224_v11 }
 0x175   :  { %v212_v12 = vpop.permute.xlu2 %211 }
 0x176   :  { %v225_v13 = vmul.f32 %v212_v12, %v761_v18 }
 0x178   :  { %229 = vst.msk [vmem:[#allocation2 + $0x8] sm:$0xff] %vm147_vm2, %v225_v13 }
 0x193   :  { %v217_v15 = vpop.permute.xlu0 %216 }
 0x194   :  { %v226_v16 = vmul.f32 %v217_v15, %v766_v22 }
 0x196   :  { %230 = vst.msk [vmem:[#allocation2 + $0x10] sm:$0xff] %vm147_vm2, %v226_v16 }
 0x19b   :  { %v222_v17 = vpop.permute.xlu1 %221 }
 0x19c   :  { %v227_v19 = vmul.f32 %v222_v17, %v771_v26 }
 0x19e   :  { %231 = vst.msk [vmem:[#allocation2 + $0x18] sm:$0xff] %vm147_vm2, %v227_v19 }
 0x19f   :  { %256 = vsyncadd [#allocation4], 512 }
 0x1a0   :  { %651 = dma.done.wait [#allocation4], 512 }
 0x1a1   :  { %652 = vsyncadd [#allocation4], 4294966784  ;;  %s658_s2 = smov 32   ;;  %v577_v14 = vld [vmem:[%s890_s1 + $0x40] sm:$0xff]  ;;  %v578_v18 = vld [vmem:[%s890_s1 + $0x48] sm:$0xff]  ;;  %vm279_vm15 = vcmask 523520  }
 0x1a2   :  { %271 = vrot.lane.b32.xlu1 %v728_v6, %s658_s2  ;;  %267 = vrot.lane.b32.xlu0 %v718_v4, %s658_s2  ;;  %v579_v20 = vld [vmem:[%s890_s1 + $0x50] sm:$0xff]  ;;  %v580_v4 = vld [vmem:[%s890_s1 + $0x58] sm:$0xff] }
 0x1aa   :  { %273 = vrot.lane.b32.xlu1 %v733_v7, %s658_s2  ;;  %269 = vrot.lane.b32.xlu0 %v723_v5, %s658_s2 }
 0x214   :  { %v272_v6 = vpop.permute.xlu1 %271  ;;  %v268_v7 = vpop.permute.xlu0 %267 }
 0x215   :  { %280 = vst.msk [vmem:[#allocation2] sm:$0xff] %vm279_vm15, %v268_v7 }
 0x216   :  { %282 = vst.msk [vmem:[#allocation2 + $0x10] sm:$0xff] %vm279_vm15, %v272_v6 }
 0x21c   :  { %v274_v5 = vpop.permute.xlu1 %273  ;;  %v270_v21 = vpop.permute.xlu0 %269 }
 0x21d   :  { %283 = vst.msk [vmem:[#allocation2 + $0x18] sm:$0xff] %vm279_vm15, %v274_v5 }
 0x21e   :  { %281 = vst.msk [vmem:[#allocation2 + $0x8] sm:$0xff] %vm279_vm15, %v270_v21 }
 0x21f   :  { %308 = vsyncadd [#allocation4], 512 }
 0x220   :  { %653 = dma.done.wait [#allocation4], 512 }
 0x221   :  { %654 = vsyncadd [#allocation4], 4294966784  ;;  %614 = vset.pattern.permute.xlu0 %v657_v29  ;;  %615 = vset.pattern.permute.xlu1 %v657_v29  ;;  %v585_v22 = vld [vmem:[%s894_s5 + $0x4] sm:$0xf]  ;;  %v582_v23 = vld [vmem:[%s893_s4 + $0x28] sm:$0xff]  ;;  %s659_s2 = smov 64  }
 0x222   :  { %613 = vset.pattern.permute.xlu2 %v657_v29  ;;  %v581_v24 = vld [vmem:[%s893_s4 + $0x20] sm:$0xff]  ;;  %595 = vmatpush.msk.msra.mxu1 %vm106_vm0, %v585_v22  ;;  %v583_v25 = vld [vmem:[%s893_s4 + $0x30] sm:$0xff]  ;;  %v584_v26 = vld [vmem:[%s893_s4 + $0x38] sm:$0xff]  ;;  %vm474_vm13 = vcmask 785920   ;;  %vm519_vm14 = vcmask 785408   ;;  %s660_s17 = smov [#allocation5]  }
 0x223   :  { %586 = vmatpush.msk.msrb.mxu0 %vm106_vm0, %v585_v22  ;;  %588 = vmatmul.msk.f32.vlgmr.msra.gmra.mxu1 %vm93_vm1, %v582_v23  ;;  %v312_v54 = vld [vmem:[%s892_s3 + $0x8] sm:$0xff]  ;;  %v311_v0 = vld [vmem:[%s892_s3] sm:$0xff]  ;;  %v314_v12 = vld [vmem:[%s892_s3 + $0x18] sm:$0xff]  ;;  %s530_s18 = sshll.u32 %s660_s17, 4  ;;  %s532_s1 = sshll.u32 %s896_s7, 4  ;;  %s531_s18 = int_to_ptr.vmem [resolvable:$true] %s530_s18  ;;  %s533_s1 = int_to_ptr.hbm [resolvable:$true] %s532_s1 }
 0x224   :  { %587 = vmatmul.msk.f32.vlgmr.msrb.gmra.mxu0 %vm93_vm1, %v581_v24  ;;  %s662_s21 = smov 8  }
 0x22b   :  { %589 = vmatmul.msk.f32.gmra.mxu1 %vm93_vm1, %v583_v25 }
 0x233   :  { %590 = vmatmul.msk.f32.gmra.mxu1 %vm93_vm1, %v584_v26 }
 0x2a0   :  { %v361_v27 = vpop.f32.mrf.mxu1 }
 0x2a1   :  { %v358_v28 = vpop.f32.mrf.mxu0  ;;  %v839_v29 = vadd.f32 %v578_v18, %v361_v27 }
 0x2a2   :  { %v843_v31 = vadd.f32 %v577_v14, %v358_v28 }
 0x2a3   :  { %v375_v30 = vmul.f32 %v839_v29, %v839_v29 }
 0x2a4   :  { %v374_v33 = vmul.f32 %v843_v31, %v843_v31 }
 0x2a5   :  { %v381_v32 = vsel %vm147_vm2, %v375_v30, 0.0 }
 0x2a6   :  { %382 = vadd.xlane.f32.xlu1 %v381_v32  ;;  %v378_v35 = vsel %vm147_vm2, %v374_v33, 0.0 }
 0x2a8   :  { %v364_v34 = vpop.f32.mrf.mxu1 }
 0x2a9   :  { %v853_v39 = vadd.f32 %v579_v20, %v364_v34  ;;  %v313_v20 = vld [vmem:[%s892_s3 + $0x10] sm:$0xff] }
 0x2ab   :  { %v376_v41 = vmul.f32 %v853_v39, %v853_v39 }
 0x2ad   :  { %v384_v42 = vsel %vm147_vm2, %v376_v41, 0.0 }
 0x2ae   :  { %379 = vadd.xlane.f32.xlu1 %v378_v35 }
 0x2b0   :  { %v367_v36 = vpop.f32.mrf.mxu1 }
 0x2b1   :  { %v849_v37 = vadd.f32 %v580_v4, %v367_v36  ;;  %v480_v36 = vld [vmem:[%s889_s0 + $0x8] sm:$0xff] }
 0x2b3   :  { %v377_v38 = vmul.f32 %v849_v37, %v849_v37 }
 0x2b5   :  { %v387_v40 = vsel %vm147_vm2, %v377_v38, 0.0 }
 0x2b6   :  { %388 = vadd.xlane.f32.xlu0 %v387_v40 }
 0x2be   :  { %385 = vadd.xlane.f32.xlu0 %v384_v42 }
 0x319   :  { %v383_v43 = vpop.xlane.xlu1 %382 }
 0x31a   :  { %617 = vrsqrt.f32 %v383_v43  ;;  %vm406_vm1 = vweird.f32 %v383_v43 }
 0x320   :  { %v618_v44 = vpop.eup %617 }
 0x321   :  { %v401_v45 = vmul.f32 %v618_v44, %v383_v43  ;;  %v380_v46 = vpop.xlane.xlu1 %379  ;;  %vm407_vm0 = vweird.f32 %v618_v44 }
 0x322   :  { %619 = vrsqrt.f32 %v380_v46  ;;  %vm408_vm3 = vmor %vm406_vm1, %vm407_vm0  ;;  %vm396_vm4 = vweird.f32 %v380_v46 }
 0x323   :  { %v402_v47 = vmul.f32 %v618_v44, %v401_v45 }
 0x325   :  { %v403_v48 = vmul.f32 0.5, %v402_v47 }
 0x327   :  { %v404_v49 = vsub.f32 1.5, %v403_v48 }
 0x328   :  { %v620_v50 = vpop.eup %619 }
 0x329   :  { %v405_v51 = vmul.f32 %v618_v44, %v404_v49  ;;  %v391_v52 = vmul.f32 %v620_v50, %v380_v46  ;;  %v389_v53 = vpop.xlane.xlu0 %388  ;;  %vm397_vm5 = vweird.f32 %v620_v50 }
 0x32a   :  { %621 = vrsqrt.f32 %v389_v53  ;;  %vm398_vm6 = vmor %vm396_vm4, %vm397_vm5  ;;  %vm426_vm7 = vweird.f32 %v389_v53 }
 0x32b   :  { %v392_v55 = vmul.f32 %v620_v50, %v391_v52  ;;  %v409_v56 = vsel %vm408_vm3, %v618_v44, %v405_v51 }
 0x32c   :  { %v431_v57 = vmul.f32 %v409_v56, %v312_v54 }
 0x32d   :  { %v393_v58 = vmul.f32 0.5, %v392_v55 }
 0x32e   :  { %441 = vperm.xlu0 %614, %v431_v57  }
 0x32f   :  { %v394_v59 = vsub.f32 1.5, %v393_v58 }
 0x330   :  { %v622_v60 = vpop.eup %621 }
 0x331   :  { %v395_v61 = vmul.f32 %v620_v50, %v394_v59  ;;  %v421_v62 = vmul.f32 %v622_v60, %v389_v53  ;;  %v386_v63 = vpop.xlane.xlu0 %385  ;;  %vm427_vm8 = vweird.f32 %v622_v60 }
 0x332   :  { %623 = vrsqrt.f32 %v386_v63  ;;  %vm428_vm9 = vmor %vm426_vm7, %vm427_vm8  ;;  %vm416_vm11 = vweird.f32 %v386_v63 }
 0x333   :  { %v422_v1 = vmul.f32 %v622_v60, %v421_v62  ;;  %v399_v2 = vsel %vm398_vm6, %v620_v50, %v395_v61 }
 0x334   :  { %v430_v3 = vmul.f32 %v399_v2, %v311_v0 }
 0x335   :  { %v423_v8 = vmul.f32 0.5, %v422_v1 }
 0x336   :  { %436 = vperm.xlu1 %615, %v430_v3  }
 0x337   :  { %v424_v9 = vsub.f32 1.5, %v423_v8 }
 0x338   :  { %v624_v10 = vpop.eup %623 }
 0x339   :  { %v411_v11 = vmul.f32 %v624_v10, %v386_v63  ;;  %v425_v13 = vmul.f32 %v622_v60, %v424_v9  ;;  %vm417_vm10 = vweird.f32 %v624_v10 }
 0x33a   :  { %vm418_vm12 = vmor %vm416_vm11, %vm417_vm10 }
 0x33b   :  { %v412_v15 = vmul.f32 %v624_v10, %v411_v11  ;;  %v429_v16 = vsel %vm428_vm9, %v622_v60, %v425_v13 }
 0x33c   :  { %v433_v17 = vmul.f32 %v429_v16, %v314_v12 }
 0x33d   :  { %v413_v19 = vmul.f32 0.5, %v412_v15 }
 0x33e   :  { %451 = vperm.xlu2 %613, %v433_v17  }
 0x33f   :  { %v414_v14 = vsub.f32 1.5, %v413_v19 }
 0x341   :  { %v415_v18 = vmul.f32 %v624_v10, %v414_v14 }
 0x343   :  { %v419_v4 = vsel %vm418_vm12, %v624_v10, %v415_v18 }
 0x344   :  { %v432_v6 = vmul.f32 %v419_v4, %v313_v20 }
 0x346   :  { %446 = vperm.xlu2 %613, %v432_v6  }
 0x398   :  { %v452_v7 = vpop.permute.xlu2 %451 }
 0x399   :  { %v457_v24 = vmul.f32 %v452_v7, %v849_v37  ;;  %v616_v37 = vld [vmem:[%s895_s6] ss:$0 sm:$0xff] }
 0x3a0   :  { %v442_v5 = vpop.permute.xlu0 %441  ;;  %v447_v22 = vpop.permute.xlu2 %446 }
 0x3a1   :  { %v455_v21 = vmul.f32 %v442_v5, %v839_v29  ;;  %v456_v23 = vmul.f32 %v447_v22, %v853_v39 }
 0x3a3   :  { %464 = vrot.lane.b32.xlu2 %v455_v21, %s659_s2 }
 0x3a8   :  { %v437_v25 = vpop.permute.xlu1 %436 }
 0x3a9   :  { %v454_v26 = vmul.f32 %v437_v25, %v843_v31  ;;  %v479_v31 = vld [vmem:[%s889_s0] sm:$0xff]  ;;  %s661_s0 = smov 128  }
 0x3ab   :  { %466 = vrot.lane.b32.xlu2 %v456_v23, %s659_s2 }
 0x3b3   :  { %468 = vrot.lane.b32.xlu2 %v457_v24, %s659_s2 }
 0x3bb   :  { %462 = vrot.lane.b32.xlu2 %v454_v26, %s659_s2 }
 0x3fd   :  { %v465_v27 = vpop.permute.xlu2 %464 }
 0x3fe   :  { %476 = vst.msk [vmem:[#allocation2 + $0x8] sm:$0xff] %vm474_vm13, %v465_v27 }
 0x405   :  { %v467_v28 = vpop.permute.xlu2 %466  ;;  %v482_v34 = vld [vmem:[#allocation2 + $0x8] sm:$0xff] }
 0x406   :  { %477 = vst.msk [vmem:[#allocation2 + $0x10] sm:$0xff] %vm474_vm13, %v467_v28 }
 0x40d   :  { %v469_v30 = vpop.permute.xlu2 %468  ;;  %v483_v33 = vld [vmem:[#allocation2 + $0x10] sm:$0xff] }
 0x40e   :  { %478 = vst.msk [vmem:[#allocation2 + $0x18] sm:$0xff] %vm474_vm13, %v469_v30 }
 0x415   :  { %v463_v29 = vpop.permute.xlu2 %462  ;;  %v484_v32 = vld [vmem:[#allocation2 + $0x18] sm:$0xff] }
 0x416   :  { %475 = vst.msk [vmem:[#allocation2] sm:$0xff] %vm474_vm13, %v463_v29  ;;  %508 = vmatpush.msra.mxu2 %v484_v32 }
 0x418   :  { %509 = vmatpush.msra.mxu2 %v483_v33 }
 0x41a   :  { %510 = vmatpush.msra.mxu2 %v482_v34 }
 0x41d   :  { %v481_v35 = vld [vmem:[#allocation2] sm:$0xff] }
 0x41e   :  { %511 = vmatpush.msra.mxu2 %v481_v35 }
 0x41f   :  { %591 = vmatmul.msk.f32.vlgmr.msra.gmra.mxu2 %vm147_vm2, %v479_v31 }
 0x427   :  { %592 = vmatmul.msk.f32.gmra.mxu2 %vm147_vm2, %v480_v36 }
 0x4a2   :  { %v513_v38 = vpop.f32.mrf.mxu2 }
 0x4a3   :  { %v514_v39 = vadd.f32 %v616_v37, %v513_v38 }
 0x4a5   :  { %520 = vst.msk [vmem:[#allocation5] sm:$0xff] %vm519_vm14, %v514_v39 }
 0x4aa   :  { %v516_v40 = vpop.f32.mrf.mxu2 }
 0x4ab   :  { %v517_v41 = vadd.f32 %v616_v37, %v516_v40 }
 0x4ad   :  { %521 = vst.msk [vmem:[#allocation5 + $0x8] sm:$0xff] %vm519_vm14, %v517_v41 }
 0x4ae   :  { %538 = dma.vmem_to_hbm [thread:$0]  %s531_s18, 256, %s533_s1, [#allocation6], %s661_s0, %s661_s0, %s662_s21  }
 0x4af   :  { %655 = dma.done.wait [#allocation6], 256  }
 0x4b0   :  { %656 = vsyncadd [#allocation6], 4294967040 }
 0x4b1   :  { %543 = vsyncpa [#allocation6], 1 }
 0x4b2   :  { %544 = vsyncmov [#allocation4] }
 0x4b5   :  { %s545_s6 = vpop.sfrf %544 }
 0x4b6   :  { %p593_p0 = scmp.ne.s32.totalorder %s545_s6, 0 }
 0x4b8   :  { %549 = shalt.err (%p593_p0)  }

</bundles_post_ra>
